<compile_context>
chip_gen: v6e
topology: v6e:2x2x1
jax: 0.10.0
libtpu: 0.0.40
codegen_flags: <defaults>
</compile_context>

<pallas_src>
import functools

import jax
import jax.numpy as jnp
from jax.experimental import pallas as pl
from jax.experimental.pallas import tpu as pltpu

EPS = 1e-10


def _round_up(x, m):
    return ((x + m - 1) // m) * m


def _raymarch_kernel(s_ref, dens_ref, lens_ref, feat_ref, out_ref, *, white_bg):
    # s_ref:    (N, N)     shifted lower-triangular ones (f32), grid-resident
    # dens_ref: (N, TR)    rays_densities[..., 0], ray axis lane-minor
    # lens_ref: (N, TR)    per-sample depths (ray_bundle.lengths)
    # feat_ref: (F, N, TR) feature channels, lane-minor rays
    # out_ref:  (F+1, TR)  rows 0..F-1 = features, row F = depth
    d = dens_ref[...].astype(jnp.float32)                       # (N, TR)
    n_pts = d.shape[0]
    n_feat = feat_ref.shape[0]

    # absorption = shifted_cumprod(1 + eps - d, shift) via exp(S @ log(x)).
    # The clamp keeps log finite even if densities stray slightly above 1.
    x = jnp.maximum(1.0 + EPS - d, EPS)
    absorption = jnp.exp(
        jnp.dot(s_ref[...], jnp.log(x), preferred_element_type=jnp.float32))
    weights = d * absorption                                     # (N, TR)

    bg = 1.0 - jnp.sum(weights, axis=0, keepdims=True)           # (1, TR)

    # One weighted reduction over N per feature channel, written straight to
    # its output row (no sublane concat); loop keeps vreg pressure bounded.
    for f in range(n_feat):
        row = jnp.sum(weights * feat_ref[f].astype(jnp.float32),
                      axis=0, keepdims=True)                     # (1, TR)
        if white_bg:
            row = row + bg
        out_ref[f:f + 1, :] = row.astype(out_ref.dtype)

    lens = lens_ref[...].astype(jnp.float32)                     # (N, TR)
    depth = jnp.sum(weights * lens, axis=0, keepdims=True)
    depth = depth + bg * lens[n_pts - 1:n_pts, :]
    out_ref[n_feat:n_feat + 1, :] = depth.astype(out_ref.dtype)


def nerf_ea_raymarcher(rays_densities, rays_features, lengths, *,
                       white_bg=True, surface_thickness=1,
                       tile_rays=2048, transport_dtype=None):
    """rays_densities: (..., N, 1); rays_features: (..., N, F); lengths: (..., N).
    Returns (..., F+1) = concat(features, depths), like the PyTorch module.
    transport_dtype (e.g. jnp.bfloat16) narrows density/feature DMA only;
    all in-kernel math stays f32."""
    *batch, n_pts, _one = rays_densities.shape
    feat_dim = rays_features.shape[-1]
    assert 1 <= surface_thickness < n_pts, "surface_thickness must be in [1, N)"

    n_rays = 1
    for b in batch:
        n_rays *= b

    # TODO(synk): PyTorch-side input validation (_check_raymarcher_inputs /
    # _check_density_bounds) is shape/bounds checking + warnings only; not ported.

    out_dtype = jnp.promote_types(rays_features.dtype, lengths.dtype)

    d = rays_densities.reshape(n_rays, n_pts, 1)[..., 0]          # (R, N)
    feat = rays_features.reshape(n_rays, n_pts, feat_dim)         # (R, N, F)
    lens = lengths.reshape(n_rays, n_pts)                         # (R, N)
    if transport_dtype is not None:
        d = d.astype(transport_dtype)
        feat = feat.astype(transport_dtype)

    # Lane-dense layout: the flattened ray axis becomes the minor (lane) dim.
    d_t = jnp.transpose(d, (1, 0))                                # (N, R)
    lens_t = jnp.transpose(lens, (1, 0))                          # (N, R)
    fe_t = jnp.transpose(feat, (2, 1, 0))                         # (F, N, R)

    # --- tile selection -----------------------------------------------------
    r128 = _round_up(max(n_rays, 1), 128)
    tile = min(_round_up(max(tile_rays, 128), 128), r128)

    # Cap the tile so the double-buffered working set stays within a v7x-safe
    # VMEM budget (~40 MiB of its 64 MiB/TC); never binding on v5e/v6e (128 MiB).
    feat_isz = jnp.dtype(fe_t.dtype).itemsize
    dens_isz = jnp.dtype(d_t.dtype).itemsize
    lens_isz = jnp.dtype(lens_t.dtype).itemsize
    per_ray_bytes = (
        2 * (feat_dim * n_pts * feat_isz + n_pts * dens_isz + n_pts * lens_isz)
        + 2 * (feat_dim + 1) * 4          # double-buffered f32 output rows
        + 4 * n_pts * 4)                  # in-kernel f32 temporaries (x, log, abs, w)
    budget = 40 << 20
    max_tile = max(128, (budget // per_ray_bytes) // 128 * 128)
    tile = min(tile, max_tile)

    # Prefer >=2 grid steps so v7x's dual TensorCores both get work on the
    # "parallel" ray axis.
    if tile == r128 and r128 >= 256:
        tile = _round_up(r128 // 2, 128)

    r_pad = _round_up(n_rays, tile)
    if r_pad != n_rays:
        pad = r_pad - n_rays
        d_t = jnp.pad(d_t, ((0, 0), (0, pad)))                    # density 0 -> weight 0
        lens_t = jnp.pad(lens_t, ((0, 0), (0, pad)))
        fe_t = jnp.pad(fe_t, ((0, 0), (0, 0), (0, pad)))

    # Shifted lower-triangular ones: S[i, j] = 1 iff j <= i - surface_thickness.
    idx = jnp.arange(n_pts)
    s_t = (idx[None, :] <= idx[:, None] - surface_thickness).astype(jnp.float32)

    # Explicit scoped-VMEM limit sized to the per-step working set (the default
    # 16/32 MiB limit would reject large tiles).
    step_bytes = per_ray_bytes * tile + 2 * n_pts * n_pts * 4
    vmem_limit = min(int(step_bytes * 1.3) + (2 << 20), 60 << 20)

    kernel = functools.partial(_raymarch_kernel, white_bg=white_bg)
    out_t = pl.pallas_call(
        kernel,
        out_shape=jax.ShapeDtypeStruct((feat_dim + 1, r_pad), jnp.float32),
        grid=(r_pad // tile,),
        in_specs=[
            pl.BlockSpec((n_pts, n_pts), lambda i: (0, 0)),
            pl.BlockSpec((n_pts, tile), lambda i: (0, i)),
            pl.BlockSpec((n_pts, tile), lambda i: (0, i)),
            pl.BlockSpec((feat_dim, n_pts, tile), lambda i: (0, 0, i)),
        ],
        out_specs=pl.BlockSpec((feat_dim + 1, tile), lambda i: (0, i)),
        compiler_params=pltpu.CompilerParams(
            dimension_semantics=("parallel",),
            vmem_limit_bytes=vmem_limit),
    )(s_t, d_t, lens_t, fe_t)

    out = jnp.transpose(out_t[:, :n_rays], (1, 0))                # (R, F+1)
    return out.reshape(*batch, feat_dim + 1).astype(out_dtype)


def _reference(rays_densities, rays_features, lengths, *, white_bg, shift, eps=EPS):
    d0 = rays_densities[..., 0]
    x = 1.0 + eps - d0
    cp = jnp.cumprod(x, axis=-1)
    absorption = jnp.concatenate(
        [jnp.ones_like(cp[..., :shift]), cp[..., :-shift]], axis=-1)
    w = d0 * absorption
    feats = (w[..., None] * rays_features).sum(-2)
    depths = (w[..., None] * lengths[..., None]).sum(-2)
    pix_alpha = w.sum(-1)
    if white_bg:
        feats = feats + 1.0 - pix_alpha[..., None]
    depths = depths + (1.0 - pix_alpha[..., None]) * lengths[..., -1:]
    return jnp.concatenate([feats, depths], axis=-1)


if __name__ == "__main__":
    key = jax.random.PRNGKey(0)
    k1, k2, k3 = jax.random.split(key, 3)

    batch, n_rays, n_pts, feat_dim = 2, 16, 8, 3   # (..., N, 1) / (..., N, F)
    rays_densities = jax.random.uniform(
        k1, (batch, n_rays, n_pts, 1), minval=0.0, maxval=0.9, dtype=jnp.float32)
    rays_features = jax.random.normal(
        k2, (batch, n_rays, n_pts, feat_dim), dtype=jnp.float32)
    # monotonically increasing sample depths per ray (ray_bundle.lengths)
    base = jnp.linspace(0.5, 4.0, n_pts, dtype=jnp.float32)
    jitter = 0.05 * jax.random.uniform(k3, (batch, n_rays, n_pts), dtype=jnp.float32)
    lengths = base[None, None, :] + jitter

    out = nerf_ea_raymarcher(rays_densities, rays_features, lengths,
                             white_bg=True, surface_thickness=1)
    out = jax.block_until_ready(out)

    ref = _reference(rays_densities, rays_features, lengths,
                     white_bg=True, shift=1)
    assert out.shape == (batch, n_rays, feat_dim + 1), out.shape
    assert jnp.allclose(out, ref, rtol=1e-4, atol=1e-4), \
        float(jnp.max(jnp.abs(out - ref)))

    print("KERNEL_OK")
</pallas_src>

<mosaic_0001>
module attributes {stable_mosaic.version = 11 : i64} {
  func.func @_raymarch_kernel(%arg0: i32, %arg1: memref<8x8xf32, #tpu.memory_space<vmem>>, %arg2: memref<8x128xf32, #tpu.memory_space<vmem>>, %arg3: memref<8x128xf32, #tpu.memory_space<vmem>>, %arg4: memref<3x8x128xf32, #tpu.memory_space<vmem>>, %arg5: memref<4x128xf32, #tpu.memory_space<vmem>>) attributes {dimension_semantics = [#tpu.dimension_semantics<parallel>], iteration_bounds = array<i64: 1>, scalar_prefetch = 0 : i64, scratch_operands = 0 : i64, tpu.core_type = #tpu.core_type<tc>, window_params = [{pipeline_mode = #tpu.pipeline_mode<synchronous>, transform_indices = @transform_0, window_bounds = array<i64: 8, 8>}, {transform_indices = @transform_1, window_bounds = array<i64: 8, 128>}, {transform_indices = @transform_2, window_bounds = array<i64: 8, 128>}, {transform_indices = @transform_3, window_bounds = array<i64: 3, 8, 128>}, {transform_indices = @transform_4, window_bounds = array<i64: 4, 128>}]} {
    %c0 = arith.constant 0 : index
    %c0_0 = arith.constant 0 : index
    %0 = vector.load %arg2[%c0, %c0_0] : memref<8x128xf32, #tpu.memory_space<vmem>>, vector<8x128xf32>
    %cst = arith.constant 1.000000e+00 : f32
    %1 = vector.broadcast %cst : f32 to vector<8x128xf32>
    %2 = arith.subf %1, %0 : vector<8x128xf32>
    %cst_1 = arith.constant 1.000000e-10 : f32
    %3 = vector.broadcast %cst_1 : f32 to vector<8x128xf32>
    %4 = arith.maximumf %2, %3 : vector<8x128xf32>
    %c0_2 = arith.constant 0 : index
    %c0_3 = arith.constant 0 : index
    %5 = vector.load %arg1[%c0_2, %c0_3] : memref<8x8xf32, #tpu.memory_space<vmem>>, vector<8x8xf32>
    %6 = math.log %4 : vector<8x128xf32>
    %cst_4 = arith.constant dense<0.000000e+00> : vector<8x128xf32>
    %7 = tpu.matmul %5, %6, %cst_4 {dimension_numbers = #tpu.dot_dimension_numbers<[1], [0], [0], [1], [0, 0, 1, 1], [], []>} : vector<8x8xf32>, vector<8x128xf32>, vector<8x128xf32> -> vector<8x128xf32>
    %8 = math.exp %7 : vector<8x128xf32>
    %9 = arith.mulf %0, %8 : vector<8x128xf32>
    %cst_5 = arith.constant dense<0.000000e+00> : vector<128xf32>
    %10 = vector.multi_reduction <add>, %9, %cst_5 [0] : vector<8x128xf32> to vector<128xf32>
    %11 = vector.shape_cast %10 : vector<128xf32> to vector<1x128xf32>
    %cst_6 = arith.constant 1.000000e+00 : f32
    %12 = vector.broadcast %cst_6 : f32 to vector<1x128xf32>
    %13 = arith.subf %12, %11 : vector<1x128xf32>
    %c0_7 = arith.constant 0 : index
    %c0_8 = arith.constant 0 : index
    %c0_9 = arith.constant 0 : index
    %14 = vector.load %arg4[%c0_7, %c0_8, %c0_9] : memref<3x8x128xf32, #tpu.memory_space<vmem>>, vector<1x8x128xf32>
    %15 = vector.shape_cast %14 : vector<1x8x128xf32> to vector<8x128xf32>
    %16 = arith.mulf %9, %15 : vector<8x128xf32>
    %cst_10 = arith.constant dense<0.000000e+00> : vector<128xf32>
    %17 = vector.multi_reduction <add>, %16, %cst_10 [0] : vector<8x128xf32> to vector<128xf32>
    %18 = vector.shape_cast %17 : vector<128xf32> to vector<1x128xf32>
    %19 = arith.addf %18, %13 : vector<1x128xf32>
    %c0_11 = arith.constant 0 : index
    %c0_12 = arith.constant 0 : index
    %20 = vector.load %arg5[%c0_11, %c0_12] : memref<4x128xf32, #tpu.memory_space<vmem>>, vector<1x128xf32>
    tpu.vector_store %arg5[%c0_11, %c0_12], %19 {strides = array<i32>} : memref<4x128xf32, #tpu.memory_space<vmem>>, vector<1x128xf32>,
    %c1 = arith.constant 1 : index
    %c0_13 = arith.constant 0 : index
    %c0_14 = arith.constant 0 : index
    %21 = vector.load %arg4[%c1, %c0_13, %c0_14] : memref<3x8x128xf32, #tpu.memory_space<vmem>>, vector<1x8x128xf32>
    %22 = vector.shape_cast %21 : vector<1x8x128xf32> to vector<8x128xf32>
    %23 = arith.mulf %9, %22 : vector<8x128xf32>
    %cst_15 = arith.constant dense<0.000000e+00> : vector<128xf32>
    %24 = vector.multi_reduction <add>, %23, %cst_15 [0] : vector<8x128xf32> to vector<128xf32>
    %25 = vector.shape_cast %24 : vector<128xf32> to vector<1x128xf32>
    %26 = arith.addf %25, %13 : vector<1x128xf32>
    %c1_16 = arith.constant 1 : index
    %c0_17 = arith.constant 0 : index
    %27 = vector.load %arg5[%c1_16, %c0_17] : memref<4x128xf32, #tpu.memory_space<vmem>>, vector<1x128xf32>
    tpu.vector_store %arg5[%c1_16, %c0_17], %26 {strides = array<i32>} : memref<4x128xf32, #tpu.memory_space<vmem>>, vector<1x128xf32>,
    %c2 = arith.constant 2 : index
    %c0_18 = arith.constant 0 : index
    %c0_19 = arith.constant 0 : index
    %28 = vector.load %arg4[%c2, %c0_18, %c0_19] : memref<3x8x128xf32, #tpu.memory_space<vmem>>, vector<1x8x128xf32>
    %29 = vector.shape_cast %28 : vector<1x8x128xf32> to vector<8x128xf32>
    %30 = arith.mulf %9, %29 : vector<8x128xf32>
    %cst_20 = arith.constant dense<0.000000e+00> : vector<128xf32>
    %31 = vector.multi_reduction <add>, %30, %cst_20 [0] : vector<8x128xf32> to vector<128xf32>
    %32 = vector.shape_cast %31 : vector<128xf32> to vector<1x128xf32>
    %33 = arith.addf %32, %13 : vector<1x128xf32>
    %c2_21 = arith.constant 2 : index
    %c0_22 = arith.constant 0 : index
    %34 = vector.load %arg5[%c2_21, %c0_22] : memref<4x128xf32, #tpu.memory_space<vmem>>, vector<1x128xf32>
    tpu.vector_store %arg5[%c2_21, %c0_22], %33 {strides = array<i32>} : memref<4x128xf32, #tpu.memory_space<vmem>>, vector<1x128xf32>,
    %c0_23 = arith.constant 0 : index
    %c0_24 = arith.constant 0 : index
    %35 = vector.load %arg3[%c0_23, %c0_24] : memref<8x128xf32, #tpu.memory_space<vmem>>, vector<8x128xf32>
    %36 = arith.mulf %9, %35 : vector<8x128xf32>
    %cst_25 = arith.constant dense<0.000000e+00> : vector<128xf32>
    %37 = vector.multi_reduction <add>, %36, %cst_25 [0] : vector<8x128xf32> to vector<128xf32>
    %38 = vector.shape_cast %37 : vector<128xf32> to vector<1x128xf32>
    %39 = vector.extract_strided_slice %35 {offsets = [7, 0], sizes = [1, 128], strides = [1, 1]} : vector<8x128xf32> to vector<1x128xf32>
    %40 = arith.mulf %13, %39 : vector<1x128xf32>
    %41 = arith.addf %38, %40 : vector<1x128xf32>
    %c3 = arith.constant 3 : index
    %c0_26 = arith.constant 0 : index
    %42 = vector.load %arg5[%c3, %c0_26] : memref<4x128xf32, #tpu.memory_space<vmem>>, vector<1x128xf32>
    tpu.vector_store %arg5[%c3, %c0_26], %41 {strides = array<i32>} : memref<4x128xf32, #tpu.memory_space<vmem>>, vector<1x128xf32>,
    return
  }
  func.func @transform_0(%arg0: i32) -> (i32, i32) {
    %c0_i32 = arith.constant 0 : i32
    %c0_i32_0 = arith.constant 0 : i32
    %c0_i32_1 = arith.constant 0 : i32
    return %c0_i32, %c0_i32_0 : i32, i32
  }
  func.func @transform_1(%arg0: i32) -> (i32, i32) {
    %c0_i32 = arith.constant 0 : i32
    %c0_i32_0 = arith.constant 0 : i32
    return %c0_i32, %arg0 : i32, i32
  }
  func.func @transform_2(%arg0: i32) -> (i32, i32) {
    %c0_i32 = arith.constant 0 : i32
    %c0_i32_0 = arith.constant 0 : i32
    return %c0_i32, %arg0 : i32, i32
  }
  func.func @transform_3(%arg0: i32) -> (i32, i32, i32) {
    %c0_i32 = arith.constant 0 : i32
    %c0_i32_0 = arith.constant 0 : i32
    %c0_i32_1 = arith.constant 0 : i32
    return %c0_i32, %c0_i32_0, %arg0 : i32, i32, i32
  }
  func.func @transform_4(%arg0: i32) -> (i32, i32) {
    %c0_i32 = arith.constant 0 : i32
    %c0_i32_0 = arith.constant 0 : i32
    return %c0_i32, %arg0 : i32, i32
  }
}

</mosaic_0001>

<bundles_post_ra>
// kernel: tpu_custom_call.1
= control target key start
LH: loop header
LB: loop body
LE: loop exit
PB: predicated region body
PF: predicated region fallthrough
CT: control target
= control target key end

     0   :  { %9 = vsyncpa [#allocation3], 0  ;;  %s395_s0 = inlined_call_operand.hbm [shape: f32[8,8], index: 0, kind: input, shape index: {}]   ;;  %s396_s1 = inlined_call_operand.hbm [shape: f32[8,128], index: 1, kind: input, shape index: {}]   ;;  %s397_s2 = inlined_call_operand.hbm [shape: f32[8,128], index: 2, kind: input, shape index: {}]   ;;  %s398_s3 = inlined_call_operand.hbm [shape: f32[3,8,128], index: 3, kind: input, shape index: {}]   ;;  %s399_s4 = inlined_call_operand.hbm [shape: f32[4,128], index: 4, kind: output, shape index: {}]  }
   0x1   :  { %10 = vsyncpa [#allocation6], 0 }
   0x2   :  { %11 = vsyncpa [#allocation9], 0 }
   0x3   :  { %12 = vsyncpa [#allocation4], 0  ;;  %s346_s15 = smov [#allocation5]   ;;  %s347_s17 = smov [#allocation2]  }
   0x4   :  { %s29_s16 = sshll.u32 %s346_s15, 4  ;;  %s19_s18 = sshll.u32 %s347_s17, 4  ;;  %s30_s16 = int_to_ptr.vmem [resolvable:$true] %s29_s16  ;;  %s20_s18 = int_to_ptr.vmem [resolvable:$true] %s19_s18 }
   0x5   :  { %s246_s19 = scalar_lea.vmem %s30_s16, 128  ;;  %p251_p1 = scmp.lt.s32.totalorder %s30_s16, %s30_s16 }
   0x6   :  { %p247_p0 = scmp.ne.s32.totalorder %s30_s16, %s246_s19  ;;  %p252_p2 = scmp.lt.s32.totalorder %s246_s19, %s246_s19 }
   0x8   :  { %p253_p3 = por %p252_p2, %p251_p1 }
   0xa   :  { %p254_p4 = pnand %p253_p3, %p247_p0 }
   0xc   :  { %257 = shalt.err (!%p254_p4)
}
   0xd   :  { %32 = dma.hbm_to_vmem [thread:$0]  %s396_s1, 128, %s30_s16, [#allocation6]  }
   0xe   :  { %s266_s22 = scalar_lea.vmem %s20_s18, 128  ;;  %p271_p6 = scmp.lt.s32.totalorder %s20_s18, %s20_s18 }
   0xf   :  { %p267_p5 = scmp.ne.s32.totalorder %s20_s18, %s266_s22  ;;  %p272_p7 = scmp.lt.s32.totalorder %s266_s22, %s266_s22 }
  0x11   :  { %p273_p8 = por %p272_p7, %p271_p6 }
  0x13   :  { %p274_p9 = pnand %p273_p8, %p267_p5 }
  0x15   :  { %277 = shalt.err (!%p274_p9)
}
  0x16   :  { %22 = dma.hbm_to_vmem [thread:$0]  %s395_s0, 128, %s20_s18, [#allocation3]  }
  0x17   :  { %s348_s25 = smov [#allocation7]   ;;  %s349_s27 = smov [#allocation8]  }
  0x18   :  { %s39_s26 = sshll.u32 %s348_s25, 4  ;;  %s48_s28 = sshll.u32 %s349_s27, 4  ;;  %s40_s26 = int_to_ptr.vmem [resolvable:$true] %s39_s26  ;;  %s49_s28 = int_to_ptr.vmem [resolvable:$true] %s48_s28 }
  0x19   :  { %s286_s29 = scalar_lea.vmem %s40_s26, 128  ;;  %p291_p11 = scmp.lt.s32.totalorder %s40_s26, %s40_s26 }
  0x1a   :  { %p287_p10 = scmp.ne.s32.totalorder %s40_s26, %s286_s29  ;;  %p292_p12 = scmp.lt.s32.totalorder %s286_s29, %s286_s29 }
  0x1c   :  { %p293_p13 = por %p292_p12, %p291_p11 }
  0x1e   :  { %p294_p0 = pnand %p293_p13, %p287_p10 }
  0x20   :  { %297 = shalt.err (!%p294_p0)
}
  0x21   :  { %42 = dma.hbm_to_vmem [thread:$0]  %s397_s2, 128, %s40_s26, [#allocation6]  }
  0x22   :  { %s306_s5 = scalar_lea.vmem %s49_s28, 384  ;;  %p311_p2 = scmp.lt.s32.totalorder %s49_s28, %s49_s28 }
  0x23   :  { %p307_p1 = scmp.ne.s32.totalorder %s49_s28, %s306_s5  ;;  %p312_p3 = scmp.lt.s32.totalorder %s306_s5, %s306_s5 }
  0x25   :  { %p313_p4 = por %p312_p3, %p311_p2 }
  0x27   :  { %p314_p5 = pnand %p313_p4, %p307_p1 }
  0x29   :  { %317 = shalt.err (!%p314_p5)
}
  0x2a   :  { %s350_s0 = smov 128   ;;  %s351_s6 = smov 8  }
  0x2b   :  { %54 = dma.hbm_to_vmem [thread:$0]  %s398_s3, 384, %s49_s28, [#allocation9], %s350_s0, %s350_s0, %s351_s6  }
  0x2c   :  { %338 = dma.done.wait [#allocation3], 128  }
  0x2d   :  { %339 = vsyncadd [#allocation3], 4294967168 }
  0x2e   :  { %340 = dma.done.wait [#allocation6], 256  }
  0x2f   :  { %341 = vsyncadd [#allocation6], 4294967040 }
  0x30   :  { %342 = dma.done.wait [#allocation9], 384  }
  0x31   :  { %343 = vsyncadd [#allocation9], 4294966912  ;;  %v352_v0 = vmov 0.0   ;;  %vm353_vm0 = vmmov 0   ;;  %v67_v1 = vld [vmem:[#allocation5] sm:$0xff]  ;;  %v70_v6 = vld [vmem:[#allocation2] sm:$0xff] }
  0x32   :  { %220 = vmatprep.subr.mxu0 %v352_v0  ;;  %222 = vmatprep.mubr.msk.f32.mxu0 %vm353_vm0, %v352_v0  ;;  %v68_v2 = vsub.f32 1.0, %v67_v1  ;;  %vm73_vm1 = vcmask 64512   ;;  %v157_v11 = vld [vmem:[#allocation8] sm:$0xff]  ;;  %v168_v12 = vld [vmem:[#allocation8 + $0x8] sm:$0xff]  ;;  %v179_v13 = vld [vmem:[#allocation8 + $0x10] sm:$0xff]  ;;  %s354_s2 = smov [#allocation10]  }
  0x33   :  { %v189_v15 = vld [vmem:[#allocation7] sm:$0xff]  ;;  %s206_s3 = sshll.u32 %s354_s2, 4  ;;  %s207_s3 = int_to_ptr.vmem [resolvable:$true] %s206_s3 }
  0x34   :  { %v69_v3 = vmax.f32 %v68_v2, 1e-10  ;;  %s318_s9 = scalar_lea.vmem %s207_s3, 64  ;;  %p323_p7 = scmp.lt.s32.totalorder %s207_s3, %s207_s3 }
  0x35   :  { %p319_p6 = scmp.ne.s32.totalorder %s207_s3, %s318_s9  ;;  %p324_p8 = scmp.lt.s32.totalorder %s318_s9, %s318_s9 }
  0x36   :  { %234 = vlog2.f32 %v69_v3 }
  0x37   :  { %p325_p9 = por %p324_p8, %p323_p7 }
  0x39   :  { %p326_p10 = pnand %p325_p9, %p319_p6 }
  0x43   :  { %v235_v4 = vpop.eup %234 }
  0x44   :  { %v72_v5 = vmul.f32 0.6931472, %v235_v4 }
  0x46   :  { %221 = vmatpush3.msra.mxu0 %v72_v5 }
  0x47   :  { %223 = vmatmul.mubr.msk.f32.vlgmr.msra.gmra.mxu0 %vm73_vm1, %v70_v6 }
 0x107   :  { %v143_v7 = vpop.f32.mrf.mxu0 }
 0x108   :  { %v147_v8 = vmul.f32 1.442695, %v143_v7 }
 0x109   :  { %v224_v9 = vpop.f32.mrf.mxu0 }
 0x10a   :  { %236 = vpow2.f32 %v147_v8 }
 0x117   :  { %v237_v10 = vpop.eup %236 }
 0x118   :  { %v149_v14 = vmul.f32 %v237_v10, %v67_v1 }
 0x11a   :  { %v150_v16 = vrot.slane %v149_v14, 4  ;;  %v158_v17 = vmul.f32 %v157_v11, %v149_v14  ;;  %v169_v18 = vmul.f32 %v168_v12, %v149_v14  ;;  %v180_v19 = vmul.f32 %v179_v13, %v149_v14 }
 0x11b   :  { %v190_v20 = vmul.f32 %v189_v15, %v149_v14 }
 0x11c   :  { %v151_v21 = vadd.f32 %v150_v16, %v149_v14  ;;  %v159_v22 = vrot.slane %v158_v17, 4  ;;  %v170_v23 = vrot.slane %v169_v18, 4  ;;  %v181_v24 = vrot.slane %v180_v19, 4 }
 0x11d   :  { %v191_v25 = vrot.slane %v190_v20, 4 }
 0x11e   :  { %v152_v26 = vrot.slane %v151_v21, 2  ;;  %v160_v27 = vadd.f32 %v159_v22, %v158_v17  ;;  %v171_v28 = vadd.f32 %v170_v23, %v169_v18  ;;  %v182_v29 = vadd.f32 %v181_v24, %v180_v19 }
 0x11f   :  { %v192_v30 = vadd.f32 %v191_v25, %v190_v20 }
 0x120   :  { %v153_v31 = vadd.f32 %v152_v26, %v151_v21  ;;  %v161_v32 = vrot.slane %v160_v27, 2  ;;  %v172_v33 = vrot.slane %v171_v28, 2  ;;  %v183_v34 = vrot.slane %v182_v29, 2 }
 0x121   :  { %v193_v35 = vrot.slane %v192_v30, 2 }
 0x122   :  { %v154_v36 = vrot.slane %v153_v31, 1  ;;  %v162_v37 = vadd.f32 %v161_v32, %v160_v27  ;;  %v173_v38 = vadd.f32 %v172_v33, %v171_v28  ;;  %v184_v39 = vadd.f32 %v183_v34, %v182_v29 }
 0x123   :  { %v194_v40 = vadd.f32 %v193_v35, %v192_v30 }
 0x124   :  { %v155_v41 = vadd.f32 %v154_v36, %v153_v31  ;;  %v163_v42 = vrot.slane %v162_v37, 1  ;;  %v174_v43 = vrot.slane %v173_v38, 1  ;;  %v185_v44 = vrot.slane %v184_v39, 1 }
 0x125   :  { %v195_v45 = vrot.slane %v194_v40, 1 }
 0x126   :  { %v156_v46 = vsub.f32 1.0, %v155_v41  ;;  %v164_v47 = vadd.f32 %v163_v42, %v162_v37  ;;  %v175_v48 = vadd.f32 %v174_v43, %v173_v38  ;;  %v186_v49 = vadd.f32 %v185_v44, %v184_v39 }
 0x127   :  { %v196_v50 = vadd.f32 %v195_v45, %v194_v40 }
 0x128   :  { %v165_v51 = vadd.f32 %v164_v47, %v156_v46  ;;  %v176_v52 = vadd.f32 %v175_v48, %v156_v46  ;;  %v187_v53 = vadd.f32 %v186_v49, %v156_v46  ;;  %v197_v54 = vmul.f32 %v189_v15, %v156_v46 }
 0x12a   :  { %166 = vst [vmem:[#allocation10] sm:$0x1] %v165_v51  ;;  %177 = vst [vmem:[#allocation10 + $0x1] sm:$0x1] %v176_v52  ;;  %v198_v55 = vadd.f32 %v197_v54, %v196_v50 }
 0x12b   :  { %188 = vst [vmem:[#allocation10 + $0x2] sm:$0x1] %v187_v53 }
 0x12c   :  { %199 = vst [vmem:[#allocation10 - $0x4] sm:$0x80] %v198_v55 }
 0x12d   :  { %329 = shalt.err (!%p326_p10)
}
 0x12e   :  { %209 = dma.vmem_to_hbm [thread:$0]  %s207_s3, 64, %s399_s4, [#allocation4]  }
 0x12f   :  { %344 = dma.done.wait [#allocation4], 64  }
 0x130   :  { %345 = vsyncadd [#allocation4], 4294967232 }
 0x131   :  { %213 = vsyncpa [#allocation3], 1 }
 0x132   :  { %214 = vsyncpa [#allocation6], 1 }
 0x133   :  { %215 = vsyncpa [#allocation9], 1 }
 0x134   :  { %216 = vsyncpa [#allocation4], 1 }

</bundles_post_ra>
